<compile_context>
chip_gen: v7x
topology: tpu7x:2x2x1
jax: 0.10.0
libtpu: 0.0.40
codegen_flags: <defaults>
</compile_context>

<pallas_src>
import functools

import jax
import jax.numpy as jnp
from jax.experimental import pallas as pl
from jax.experimental.pallas import tpu as pltpu

IN_DIM = 28 * 28        # 784
HIDDEN = 32
OUT = 10
HIDDEN_PAD = 128        # lane-dense hidden width
OUT_PAD = 128           # lane-dense output width


def _round_up(v, m):
    return (v + m - 1) // m * m


def _mlp_kernel(x_ref, w1_ref, b1_ref, w3_ref, b3_ref, o_ref):
    # x_ref: (TILE_N, 784) bf16    w1_ref: (784, 128) bf16
    # b1_ref: (1, 128) f32         w3_ref: (128, 128) f32   b3_ref: (1, 128) f32
    h = jnp.dot(x_ref[...], w1_ref[...],
                preferred_element_type=jnp.float32)            # (TILE_N, 128)
    h = jnp.maximum(h + b1_ref[...], 0.0)                      # bias + ReLU (f32, VPU)
    out = jnp.dot(h, w3_ref[...],
                  preferred_element_type=jnp.float32)          # (TILE_N, 128)
    o_ref[...] = out + b3_ref[...]


@functools.partial(jax.jit, static_argnames=("tile_n",))
def net_mnist_forward(x, w1_t, b1, w3_t, b3, *, tile_n=512):
    """x: (N, 1, 28, 28) float32 (NCHW).  Returns logits (N, 10) float32."""
    n = x.shape[0]
    x2d = x.reshape(n, IN_DIM).astype(jnp.bfloat16)   # stream input in bf16

    # Zero-pad params to lane-dense shapes (zeros keep the math exact).
    w1p = jnp.zeros((IN_DIM, HIDDEN_PAD), jnp.bfloat16)
    w1p = w1p.at[:, :HIDDEN].set(w1_t.astype(jnp.bfloat16))
    b1p = jnp.zeros((1, HIDDEN_PAD), jnp.float32).at[:, :HIDDEN].set(b1.reshape(1, -1))
    w3p = jnp.zeros((HIDDEN_PAD, OUT_PAD), jnp.float32).at[:HIDDEN, :OUT].set(w3_t)
    b3p = jnp.zeros((1, OUT_PAD), jnp.float32).at[:, :OUT].set(b3.reshape(1, -1))

    # Batch tiling: multiple of 8 sublanes, capped at tile_n (VMEM budget ok on
    # v5e/v6e/v7x: 512 * 784 * 2 B ~= 0.8 MiB per double-buffered input tile).
    tile = min(tile_n, _round_up(n, 8))
    n_pad = _round_up(n, tile)
    if n_pad != n:
        x2d = jnp.pad(x2d, ((0, n_pad - n), (0, 0)))

    grid = (n_pad // tile,)

    flops = 2 * n_pad * (IN_DIM * HIDDEN_PAD + HIDDEN_PAD * OUT_PAD)
    bytes_accessed = (n_pad * IN_DIM * 2            # x (bf16 in)
                      + IN_DIM * HIDDEN_PAD * 2     # W1 (bf16)
                      + HIDDEN_PAD * OUT_PAD * 4    # W3
                      + (HIDDEN_PAD + OUT_PAD) * 4  # biases
                      + n_pad * OUT_PAD * 4)        # output

    out = pl.pallas_call(
        _mlp_kernel,
        out_shape=jax.ShapeDtypeStruct((n_pad, OUT_PAD), jnp.float32),
        grid=grid,
        in_specs=[
            pl.BlockSpec((tile, IN_DIM), lambda i: (i, 0)),          # x: streamed
            pl.BlockSpec((IN_DIM, HIDDEN_PAD), lambda i: (0, 0)),    # W1: resident
            pl.BlockSpec((1, HIDDEN_PAD), lambda i: (0, 0)),         # b1: resident
            pl.BlockSpec((HIDDEN_PAD, OUT_PAD), lambda i: (0, 0)),   # W3: resident
            pl.BlockSpec((1, OUT_PAD), lambda i: (0, 0)),            # b3: resident
        ],
        out_specs=pl.BlockSpec((tile, OUT_PAD), lambda i: (i, 0)),
        compiler_params=pltpu.CompilerParams(
            dimension_semantics=("parallel",)),
        cost_estimate=pl.CostEstimate(flops=flops, transcendentals=0,
                                      bytes_accessed=bytes_accessed),
    )(x2d, w1p, b1p, w3p, b3p)

    return out[:n, :OUT]


def init_params(key):
    """Deterministic PyTorch-style (uniform +-1/sqrt(fan_in)) parameter init."""
    k1, k2, k3, k4 = jax.random.split(key, 4)
    bound1 = 1.0 / jnp.sqrt(IN_DIM)
    bound3 = 1.0 / jnp.sqrt(HIDDEN)
    # Stored directly in (in, out) layout == transpose of PyTorch's (out, in).
    w1_t = jax.random.uniform(k1, (IN_DIM, HIDDEN), jnp.float32, -bound1, bound1)
    b1 = jax.random.uniform(k2, (HIDDEN,), jnp.float32, -bound1, bound1)
    w3_t = jax.random.uniform(k3, (HIDDEN, OUT), jnp.float32, -bound3, bound3)
    b3 = jax.random.uniform(k4, (OUT,), jnp.float32, -bound3, bound3)
    return w1_t, b1, w3_t, b3


if __name__ == "__main__":
    key = jax.random.PRNGKey(0)
    kx, kp = jax.random.split(key)

    batch = 8
    x = jax.random.normal(kx, (batch, 1, 28, 28), jnp.float32)  # NCHW input
    w1_t, b1, w3_t, b3 = init_params(kp)

    logits = net_mnist_forward(x, w1_t, b1, w3_t, b3)
    logits = jax.block_until_ready(logits)
    assert logits.shape == (batch, OUT)

    # Reference with the same bf16 input streaming (matches kernel math).
    x2d = x.reshape(batch, IN_DIM)
    h_ref = jnp.dot(x2d.astype(jnp.bfloat16), w1_t.astype(jnp.bfloat16),
                    preferred_element_type=jnp.float32) + b1
    ref_bf16 = jnp.maximum(h_ref, 0.0) @ w3_t + b3
    assert jnp.allclose(logits, ref_bf16, atol=1e-3, rtol=1e-3)

    # Loose check against the pure-f32 PyTorch semantics (bf16 streaming only
    # introduces small rounding noise on the input matmul).
    ref_f32 = jnp.maximum(x2d @ w1_t + b1, 0.0) @ w3_t + b3
    assert jnp.allclose(logits, ref_f32, atol=1e-1, rtol=1e-1)

    print("KERNEL_OK")
</pallas_src>

<mosaic_0001>
module attributes {stable_mosaic.version = 11 : i64} {
  func.func @_mlp_kernel(%arg0: i32, %arg1: memref<8x784xbf16, #tpu.memory_space<vmem>>, %arg2: memref<784x128xbf16, #tpu.memory_space<vmem>>, %arg3: memref<1x128xf32, #tpu.memory_space<vmem>>, %arg4: memref<128x128xf32, #tpu.memory_space<vmem>>, %arg5: memref<1x128xf32, #tpu.memory_space<vmem>>, %arg6: memref<8x128xf32, #tpu.memory_space<vmem>>) attributes {dimension_semantics = [#tpu.dimension_semantics<parallel>], iteration_bounds = array<i64: 1>, scalar_prefetch = 0 : i64, scratch_operands = 0 : i64, tpu.core_type = #tpu.core_type<tc>, window_params = [{transform_indices = @transform_0, window_bounds = array<i64: 8, 784>}, {pipeline_mode = #tpu.pipeline_mode<synchronous>, transform_indices = @transform_1, window_bounds = array<i64: 784, 128>}, {pipeline_mode = #tpu.pipeline_mode<synchronous>, transform_indices = @transform_2, window_bounds = array<i64: 1, 128>}, {pipeline_mode = #tpu.pipeline_mode<synchronous>, transform_indices = @transform_3, window_bounds = array<i64: 128, 128>}, {pipeline_mode = #tpu.pipeline_mode<synchronous>, transform_indices = @transform_4, window_bounds = array<i64: 1, 128>}, {transform_indices = @transform_5, window_bounds = array<i64: 8, 128>}]} {
    %c0 = arith.constant 0 : index
    %c0_0 = arith.constant 0 : index
    %0 = vector.load %arg1[%c0, %c0_0] : memref<8x784xbf16, #tpu.memory_space<vmem>>, vector<8x784xbf16>
    %c0_1 = arith.constant 0 : index
    %c0_2 = arith.constant 0 : index
    %1 = vector.load %arg2[%c0_1, %c0_2] : memref<784x128xbf16, #tpu.memory_space<vmem>>, vector<784x128xbf16>
    %cst = arith.constant dense<0.000000e+00> : vector<8x128xf32>
    %2 = tpu.matmul %0, %1, %cst {dimension_numbers = #tpu.dot_dimension_numbers<[1], [0], [0], [1], [0, 0, 1, 1], [], []>} : vector<8x784xbf16>, vector<784x128xbf16>, vector<8x128xf32> -> vector<8x128xf32>
    %c0_3 = arith.constant 0 : index
    %c0_4 = arith.constant 0 : index
    %3 = vector.load %arg3[%c0_3, %c0_4] : memref<1x128xf32, #tpu.memory_space<vmem>>, vector<1x128xf32>
    %4 = vector.broadcast %3 : vector<1x128xf32> to vector<8x128xf32>
    %5 = arith.addf %2, %4 : vector<8x128xf32>
    %cst_5 = arith.constant 0.000000e+00 : f32
    %6 = vector.broadcast %cst_5 : f32 to vector<8x128xf32>
    %7 = arith.maximumf %5, %6 : vector<8x128xf32>
    %c0_6 = arith.constant 0 : index
    %c0_7 = arith.constant 0 : index
    %8 = vector.load %arg4[%c0_6, %c0_7] : memref<128x128xf32, #tpu.memory_space<vmem>>, vector<128x128xf32>
    %cst_8 = arith.constant dense<0.000000e+00> : vector<8x128xf32>
    %9 = tpu.matmul %7, %8, %cst_8 {dimension_numbers = #tpu.dot_dimension_numbers<[1], [0], [0], [1], [0, 0, 1, 1], [], []>} : vector<8x128xf32>, vector<128x128xf32>, vector<8x128xf32> -> vector<8x128xf32>
    %c0_9 = arith.constant 0 : index
    %c0_10 = arith.constant 0 : index
    %10 = vector.load %arg5[%c0_9, %c0_10] : memref<1x128xf32, #tpu.memory_space<vmem>>, vector<1x128xf32>
    %11 = vector.broadcast %10 : vector<1x128xf32> to vector<8x128xf32>
    %12 = arith.addf %9, %11 : vector<8x128xf32>
    %c0_11 = arith.constant 0 : index
    %c0_12 = arith.constant 0 : index
    %13 = vector.load %arg6[%c0_11, %c0_12] : memref<8x128xf32, #tpu.memory_space<vmem>>, vector<8x128xf32>
    tpu.vector_store %arg6[%c0_11, %c0_12], %12 {strides = array<i32>} : memref<8x128xf32, #tpu.memory_space<vmem>>, vector<8x128xf32>,
    return
  }
  func.func @transform_0(%arg0: i32) -> (i32, i32) {
    %c0_i32 = arith.constant 0 : i32
    %c0_i32_0 = arith.constant 0 : i32
    return %arg0, %c0_i32 : i32, i32
  }
  func.func @transform_1(%arg0: i32) -> (i32, i32) {
    %c0_i32 = arith.constant 0 : i32
    %c0_i32_0 = arith.constant 0 : i32
    %c0_i32_1 = arith.constant 0 : i32
    return %c0_i32, %c0_i32_0 : i32, i32
  }
  func.func @transform_2(%arg0: i32) -> (i32, i32) {
    %c0_i32 = arith.constant 0 : i32
    %c0_i32_0 = arith.constant 0 : i32
    %c0_i32_1 = arith.constant 0 : i32
    return %c0_i32, %c0_i32_0 : i32, i32
  }
  func.func @transform_3(%arg0: i32) -> (i32, i32) {
    %c0_i32 = arith.constant 0 : i32
    %c0_i32_0 = arith.constant 0 : i32
    %c0_i32_1 = arith.constant 0 : i32
    return %c0_i32, %c0_i32_0 : i32, i32
  }
  func.func @transform_4(%arg0: i32) -> (i32, i32) {
    %c0_i32 = arith.constant 0 : i32
    %c0_i32_0 = arith.constant 0 : i32
    %c0_i32_1 = arith.constant 0 : i32
    return %c0_i32, %c0_i32_0 : i32, i32
  }
  func.func @transform_5(%arg0: i32) -> (i32, i32) {
    %c0_i32 = arith.constant 0 : i32
    %c0_i32_0 = arith.constant 0 : i32
    return %arg0, %c0_i32 : i32, i32
  }
}

</mosaic_0001>

<bundles_post_ra>
// kernel: net_mnist_forward.1
= control target key start
LH: loop header
LB: loop body
LE: loop exit
PB: predicated region body
PF: predicated region fallthrough
CT: control target
= control target key end

     0   :  { %v1015_v43 = vmov 0.0   ;;  %vm1016_vm0 = vmmov 0   ;;  %s1276_s0 = inlined_call_operand.vmem [shape: bf16[8,784], index: 0, kind: input, shape index: {}]   ;;  %s1277_s1 = inlined_call_operand.vmem [shape: bf16[784,128], index: 1, kind: input, shape index: {}]   ;;  %s1278_s2 = inlined_call_operand.vmem [shape: f32[1,128], index: 2, kind: input, shape index: {}]   ;;  %s1279_s3 = inlined_call_operand.vmem [shape: f32[128,128], index: 3, kind: input, shape index: {}]   ;;  %s1280_s4 = inlined_call_operand.vmem [shape: f32[1,128], index: 4, kind: input, shape index: {}]   ;;  %s1281_s5 = inlined_call_operand.hbm [shape: f32[8,128], index: 5, kind: output, shape index: {}]  }
   0x1   :  { %v935_v0 = vld [vmem:[%s1277_s1 + $0x40] sm:$0xff]   ;;  %v939_v4 = vld [vmem:[%s1277_s1 + $0x48] sm:$0xff]   ;;  %v943_v8 = vld [vmem:[%s1277_s1 + $0x50] sm:$0xff]  }
   0x2   :  { %v936_v1 = vld [vmem:[%s1277_s1] sm:$0xff]   ;;  %781 = vmatprep.subr.bf16.mxu0 %v935_v0  ;;  %v940_v5 = vld [vmem:[%s1277_s1 + $0x8] sm:$0xff]   ;;  %v944_v9 = vld [vmem:[%s1277_s1 + $0x10] sm:$0xff]  }
   0x3   :  { %v937_v2 = vld [vmem:[%s1277_s1 + $0xc0] sm:$0xff]   ;;  %782 = vmatpush3.bf16.msra.mxu0 %v936_v1  ;;  %v941_v6 = vld [vmem:[%s1277_s1 + $0xc8] sm:$0xff]   ;;  %v945_v10 = vld [vmem:[%s1277_s1 + $0xd0] sm:$0xff]  }
   0x4   :  { %v938_v3 = vld [vmem:[%s1277_s1 + $0x80] sm:$0xff]   ;;  %803 = vmatprep.subr.bf16.mxu1 %v937_v2  ;;  %783 = vmatprep.subr.bf16.mxu0 %v939_v4  ;;  %v942_v7 = vld [vmem:[%s1277_s1 + $0x88] sm:$0xff]   ;;  %v946_v11 = vld [vmem:[%s1277_s1 + $0x90] sm:$0xff]  }
   0x5   :  { %804 = vmatpush3.bf16.msra.mxu1 %v938_v3  ;;  %v947_v12 = vld [vmem:[%s1277_s1 + $0x58] sm:$0xff]   ;;  %v951_v16 = vld [vmem:[%s1277_s1 + $0x60] sm:$0xff]   ;;  %v955_v20 = vld [vmem:[%s1277_s1 + $0x68] sm:$0xff]  }
   0x6   :  { %805 = vmatprep.subr.bf16.mxu1 %v941_v6  ;;  %v948_v13 = vld [vmem:[%s1277_s1 + $0x18] sm:$0xff]   ;;  %v952_v17 = vld [vmem:[%s1277_s1 + $0x20] sm:$0xff]   ;;  %v956_v21 = vld [vmem:[%s1277_s1 + $0x28] sm:$0xff]  }
   0x7   :  { %784 = vmatpush3.bf16.msra.mxu0 %v940_v5  ;;  %v949_v14 = vld [vmem:[%s1277_s1 + $0xd8] sm:$0xff]   ;;  %v953_v18 = vld [vmem:[%s1277_s1 + $0xe0] sm:$0xff]   ;;  %v957_v22 = vld [vmem:[%s1277_s1 + $0xe8] sm:$0xff]  }
   0x8   :  { %785 = vmatprep.subr.bf16.mxu0 %v943_v8  ;;  %v950_v15 = vld [vmem:[%s1277_s1 + $0x98] sm:$0xff]   ;;  %v954_v19 = vld [vmem:[%s1277_s1 + $0xa0] sm:$0xff]   ;;  %v958_v23 = vld [vmem:[%s1277_s1 + $0xa8] sm:$0xff]  }
   0x9   :  { %806 = vmatpush3.bf16.msra.mxu1 %v942_v7  ;;  %v959_v24 = vld [vmem:[%s1277_s1 + $0x70] sm:$0xff]   ;;  %v963_v28 = vld [vmem:[%s1277_s1 + $0x78] sm:$0xff]   ;;  %v22_v31 = vld [vmem:[%s1276_s0] sm:$0xff] }
   0xa   :  { %807 = vmatprep.subr.bf16.mxu1 %v945_v10  ;;  %v960_v25 = vld [vmem:[%s1277_s1 + $0x30] sm:$0xff]   ;;  %v964_v29 = vld [vmem:[%s1277_s1 + $0x38] sm:$0xff]   ;;  %v723_v32 = vcombine.low %v22_v31, %v22_v31  ;;  %v724_v33 = vcombine.high %v22_v31, %v22_v31  ;;  %v969_v35 = vld [vmem:[%s1277_s1 + $0x140] sm:$0xff]  }
   0xb   :  { %786 = vmatpush3.bf16.msra.mxu0 %v944_v9  ;;  %v961_v26 = vld [vmem:[%s1277_s1 + $0xf0] sm:$0xff]   ;;  %v965_v30 = vld [vmem:[%s1277_s1 + $0xf8] sm:$0xff]   ;;  %v23_v36 = vld [vmem:[%s1276_s0 + $0x8] sm:$0xff] }
   0xc   :  { %787 = vmatprep.subr.bf16.mxu0 %v947_v12  ;;  %v962_v27 = vld [vmem:[%s1277_s1 + $0xb0] sm:$0xff]   ;;  %v968_v34 = vld [vmem:[%s1277_s1 + $0xb8] sm:$0xff]   ;;  %485 = vmatprep.mubr.bf16.mxu0 %v724_v33  ;;  %v725_v37 = vcombine.low %v23_v36, %v23_v36  ;;  %v726_v38 = vcombine.high %v23_v36, %v23_v36  ;;  %v972_v39 = vld [vmem:[%s1277_s1 + $0x100] sm:$0xff]  }
   0xd   :  { %808 = vmatpush3.bf16.msra.mxu1 %v946_v11  ;;  %v973_v40 = vld [vmem:[%s1277_s1 + $0x148] sm:$0xff]   ;;  %v975_v42 = vld [vmem:[%s1277_s1 + $0x150] sm:$0xff]   ;;  %v977_v45 = vld [vmem:[%s1277_s1 + $0x158] sm:$0xff]  }
   0xe   :  { %809 = vmatprep.subr.bf16.mxu1 %v949_v14  ;;  %525 = vmatprep.mubr.bf16.mxu1 %v726_v38  ;;  %v974_v41 = vld [vmem:[%s1277_s1 + $0x108] sm:$0xff]   ;;  %v976_v44 = vld [vmem:[%s1277_s1 + $0x110] sm:$0xff]   ;;  %v978_v46 = vld [vmem:[%s1277_s1 + $0x118] sm:$0xff]  }
   0xf   :  { %788 = vmatpush3.bf16.msra.mxu0 %v948_v13  ;;  %v979_v47 = vld [vmem:[%s1277_s1 + $0x160] sm:$0xff]   ;;  %v981_v49 = vld [vmem:[%s1277_s1 + $0x168] sm:$0xff]   ;;  %v24_v51 = vld [vmem:[%s1276_s0 + $0x10] sm:$0xff] }
  0x10   :  { %789 = vmatprep.subr.bf16.mxu0 %v951_v16  ;;  %v980_v48 = vld [vmem:[%s1277_s1 + $0x120] sm:$0xff]   ;;  %v728_v52 = vcombine.high %v24_v51, %v24_v51  ;;  %v990_v53 = vld [vmem:[%s1276_s0 + $0x18] ss:$0 sps:$4 sm:$0xff]  }
  0x11   :  { %810 = vmatpush3.bf16.msra.mxu1 %v950_v15  ;;  %v987_v50 = vld [vmem:[%s1277_s1 + $0x180] sm:$0xff]  }
  0x12   :  { %811 = vmatprep.subr.bf16.mxu1 %v953_v18 }
  0x13   :  { %790 = vmatpush3.bf16.msra.mxu0 %v952_v17 }
  0x14   :  { %791 = vmatprep.subr.bf16.mxu0 %v955_v20 }
  0x15   :  { %812 = vmatpush3.bf16.msra.mxu1 %v954_v19 }
  0x16   :  { %813 = vmatprep.subr.bf16.mxu1 %v957_v22 }
  0x17   :  { %792 = vmatpush3.bf16.msra.mxu0 %v956_v21 }
  0x18   :  { %793 = vmatprep.subr.bf16.mxu0 %v959_v24 }
  0x19   :  { %814 = vmatpush3.bf16.msra.mxu1 %v958_v23 }
  0x1a   :  { %815 = vmatprep.subr.bf16.mxu1 %v961_v26 }
  0x1b   :  { %794 = vmatpush3.bf16.msra.mxu0 %v960_v25 }
  0x1c   :  { %795 = vmatprep.subr.bf16.mxu0 %v963_v28 }
  0x1d   :  { %816 = vmatpush3.bf16.msra.mxu1 %v962_v27 }
  0x1e   :  { %817 = vmatprep.subr.bf16.mxu1 %v965_v30 }
  0x1f   :  { %796 = vmatpush3.bf16.msra.mxu0 %v964_v29 }
  0x20   :  { %825 = vmatprep.subr.bf16.mxu0 %v969_v35 }
  0x21   :  { %818 = vmatpush3.bf16.msra.mxu1 %v968_v34 }
  0x22   :  { %486 = vmatmul.mubr.bf16.vlgmr.msra.gmra.mrb[0].mxu0 %v723_v32  ;;  %866 = vmatprep.subr.bf16.mxu1 %v1015_v43 }
  0x23   :  { %826 = vmatpush3.bf16.msra.mxu0 %v972_v39 }
  0x24   :  { %526 = vmatmul.mubr.bf16.vlgmr.msra.gmra.mrb[0].mxu1 %v725_v37  ;;  %827 = vmatprep.subr.bf16.mxu0 %v973_v40 }
  0x25   :  { %868 = vmatprep.mubr.msk.bf16.mxu1 %vm1016_vm0, %v1015_v43 }
  0x27   :  { %828 = vmatpush3.bf16.msra.mxu0 %v974_v41 }
  0x28   :  { %829 = vmatprep.subr.bf16.mxu0 %v975_v42 }
  0x2b   :  { %830 = vmatpush3.bf16.msra.mxu0 %v976_v44 }
  0x2c   :  { %831 = vmatprep.subr.bf16.mxu0 %v977_v45 }
  0x2f   :  { %832 = vmatpush3.bf16.msra.mxu0 %v978_v46 }
  0x30   :  { %833 = vmatprep.subr.bf16.mxu0 %v979_v47 }
  0x31   :  { %10 = vsyncpa [#allocation3], 0  ;;  %867 = vmatpush3.bf16.msra.mxu1 %v987_v50  ;;  %vm449_vm1 = vcmask 130048   ;;  %v982_v54 = vld [vmem:[%s1277_s1 + $0x128] sm:$0xff]   ;;  %565 = vmatprep.mubr.bf16.mxu0 %v728_v52  ;;  %v983_v55 = vld [vmem:[%s1277_s1 + $0x170] sm:$0xff]   ;;  %v727_v59 = vcombine.low %v24_v51, %v24_v51  ;;  %v1017_v63 = vmov 0.0|0.0  }
  0x32   :  { %v984_v56 = vld [vmem:[%s1277_s1 + $0x130] sm:$0xff]   ;;  %v985_v57 = vld [vmem:[%s1277_s1 + $0x178] sm:$0xff]   ;;  %v614_v60 = vld [vmem:[%s1279_s3] sm:$0xff]  ;;  %907 = vmatprep.subr.bf16.mxu1 %v1017_v63  ;;  %s1018_s29 = smov [#allocation2]  }
  0x33   :  { %834 = vmatpush3.bf16.msra.mxu0 %v980_v48  ;;  %v986_v58 = vld [vmem:[%s1277_s1 + $0x138] sm:$0xff]   ;;  %v615_v61 = vld [vmem:[%s1279_s3 + $0x8] sm:$0xff]  ;;  %v616_v62 = vld [vmem:[%s1279_s3 + $0x10] sm:$0xff]  ;;  %s714_s30 = sshll.u32 %s1018_s29, 4  ;;  %s715_s30 = int_to_ptr.vmem [resolvable:$true] %s714_s30 }
  0x34   :  { %835 = vmatprep.subr.bf16.mxu0 %v981_v49  ;;  %869 = vmatmul.mubr.msk.bf16.vlgmr.msra.gmra.mrb[4].mxu1 %vm449_vm1, %v990_v53  ;;  %v908_v0 = vpack.c.bf16 %v615_v61, %v614_v60  ;;  %v617_v1 = vld [vmem:[%s1279_s3 + $0x18] sm:$0xff]  ;;  %v618_v3 = vld [vmem:[%s1279_s3 + $0x20] sm:$0xff]  ;;  %v619_v4 = vld [vmem:[%s1279_s3 + $0x28] sm:$0xff]  ;;  %s991_s6 = scalar_lea.vmem %s715_s30, 128  ;;  %p996_p1 = scmp.lt.s32.totalorder %s715_s30, %s715_s30 }
  0x35   :  { %904 = vmatprep.mubr.msk.f32.mxu1 %vm1016_vm0, %v1015_v43  ;;  %v911_v2 = vpack.c.bf16 %v617_v1, %v616_v62  ;;  %v914_v5 = vpack.c.bf16 %v619_v4, %v618_v3  ;;  %v620_v6 = vld [vmem:[%s1279_s3 + $0x30] sm:$0xff]  ;;  %v621_v7 = vld [vmem:[%s1279_s3 + $0x38] sm:$0xff]  ;;  %v622_v9 = vld [vmem:[%s1279_s3 + $0x40] sm:$0xff]  ;;  %p992_p0 = scmp.ne.s32.totalorder %s715_s30, %s991_s6  ;;  %p997_p2 = scmp.lt.s32.totalorder %s991_s6, %s991_s6 }
  0x36   :  { %909 = vmatpush3.bf16.msra.mxu1 %v908_v0  ;;  %v917_v8 = vpack.c.bf16 %v621_v7, %v620_v6  ;;  %v623_v10 = vld [vmem:[%s1279_s3 + $0x48] sm:$0xff]  ;;  %v624_v12 = vld [vmem:[%s1279_s3 + $0x50] sm:$0xff]  ;;  %v625_v13 = vld [vmem:[%s1279_s3 + $0x58] sm:$0xff] }
  0x37   :  { %836 = vmatpush3.bf16.msra.mxu0 %v982_v54  ;;  %910 = vmatprep.subr.bf16.mxu1 %v1017_v63  ;;  %v920_v11 = vpack.c.bf16 %v623_v10, %v622_v9  ;;  %v923_v14 = vpack.c.bf16 %v625_v13, %v624_v12  ;;  %v626_v15 = vld [vmem:[%s1279_s3 + $0x60] sm:$0xff]  ;;  %v627_v16 = vld [vmem:[%s1279_s3 + $0x68] sm:$0xff]  ;;  %v628_v18 = vld [vmem:[%s1279_s3 + $0x70] sm:$0xff]  ;;  %p998_p3 = por %p997_p2, %p996_p1 }
  0x38   :  { %837 = vmatprep.subr.bf16.mxu0 %v983_v55  ;;  %v926_v17 = vpack.c.bf16 %v627_v16, %v626_v15  ;;  %v629_v19 = vld [vmem:[%s1279_s3 + $0x78] sm:$0xff]  ;;  %v722_v22 = vld [vmem:[%s1278_s2] ss:$0 sm:$0xff] }
  0x39   :  { %v929_v20 = vpack.c.bf16 %v629_v19, %v628_v18  ;;  %v780_v46 = vld [vmem:[%s1280_s4] ss:$0 sm:$0xff]  ;;  %p999_p4 = pnand %p998_p3, %p992_p0 }
  0x3a   :  { %912 = vmatpush3.bf16.msra.mxu1 %v911_v2 }
  0x3b   :  { %838 = vmatpush3.bf16.msra.mxu0 %v984_v56  ;;  %913 = vmatprep.subr.bf16.mxu1 %v1017_v63 }
  0x3c   :  { %839 = vmatprep.subr.bf16.mxu0 %v985_v57 }
  0x3e   :  { %915 = vmatpush3.bf16.msra.mxu1 %v914_v5 }
  0x3f   :  { %840 = vmatpush3.bf16.msra.mxu0 %v986_v58  ;;  %916 = vmatprep.subr.bf16.mxu1 %v1017_v63 }
  0x42   :  { %566 = vmatmul.mubr.bf16.vlgmr.msra.gmra.mrb[4].mxu0 %v727_v59  ;;  %918 = vmatpush3.bf16.msra.mxu1 %v917_v8 }
  0x43   :  { %919 = vmatprep.subr.bf16.mxu1 %v1017_v63 }
  0x46   :  { %921 = vmatpush3.bf16.msra.mxu1 %v920_v11 }
  0x47   :  { %922 = vmatprep.subr.bf16.mxu1 %v1017_v63 }
  0x4a   :  { %924 = vmatpush3.bf16.msra.mxu1 %v923_v14 }
  0x4b   :  { %925 = vmatprep.subr.bf16.mxu1 %v1017_v63 }
  0x4e   :  { %927 = vmatpush3.bf16.msra.mxu1 %v926_v17 }
  0x4f   :  { %928 = vmatprep.subr.bf16.mxu1 %v1017_v63 }
  0x52   :  { %930 = vmatpush3.bf16.msra.mxu1 %v929_v20 }
  0xf5   :  { %v797_v21 = vpop.f32.mrb[0].mxu0 }
  0xf6   :  { %v798_v23 = vpop.f32.mrb[1].mxu0 }
  0xf7   :  { %v799_v24 = vadd.f32 %v798_v23, %v797_v21  ;;  %v800_v25 = vpop.f32.mrb[2].mxu0  ;;  %v819_v26 = vpop.f32.mrb[0].mxu1 }
  0xf8   :  { %v801_v27 = vpop.f32.mrb[3].mxu0  ;;  %v820_v28 = vpop.f32.mrb[1].mxu1 }
  0xf9   :  { %v488_v29 = vadd.f32 %v799_v24, %v722_v22  ;;  %v821_v30 = vadd.f32 %v820_v28, %v819_v26  ;;  %v822_v31 = vpop.f32.mrb[2].mxu1 }
  0xfa   :  { %v823_v32 = vpop.f32.mrb[3].mxu1 }
  0xfb   :  { %v528_v33 = vadd.f32 %v821_v30, %v488_v29 }
 0x107   :  { %v607_v34 = vpop.f32.mrb[4].mxu1 }
 0x108   :  { %v870_v35 = vpop.f32.mrb[5].mxu1 }
 0x109   :  { %v610_v36 = vpop.f32.mrb[6].mxu1 }
 0x10a   :  { %v871_v37 = vpop.f32.mrb[7].mxu1 }
 0x115   :  { %v841_v38 = vpop.f32.mrb[4].mxu0 }
 0x116   :  { %v842_v39 = vpop.f32.mrb[5].mxu0 }
 0x117   :  { %v843_v40 = vadd.f32 %v842_v39, %v841_v38  ;;  %v844_v41 = vpop.f32.mrb[6].mxu0 }
 0x118   :  { %v845_v42 = vpop.f32.mrb[7].mxu0 }
 0x119   :  { %v568_v43 = vadd.f32 %v843_v40, %v528_v33 }
 0x11b   :  { %v608_v44 = vadd.f32 %v607_v34, %v568_v43 }
 0x11d   :  { %v613_v45 = vmax.f32 %v608_v44, 0.0 }
 0x11f   :  { %905 = vmatmul.mubr.f32.vlgmr.msra.gmra.mrb[8].mxu1 %v613_v45 }
 0x1f2   :  { %v703_v47 = vpop.f32.mrb[8].mxu1 }
 0x1f3   :  { %v704_v48 = vadd.f32 %v780_v46, %v703_v47  ;;  %v906_v49 = vpop.f32.mrb[9].mxu1 }
 0x1f5   :  { %707 = vst [vmem:[#allocation2] sm:$0xff] %v704_v48 }
 0x1f6   :  { %1002 = shalt.err (!%p999_p4)
}
 0x1f7   :  { %s1003_s9 = scalar_lea.hbm %s1281_s5, 128 }
 0x1f8   :  { %p1004_p5 = scmp.ne.s32.totalorder %s1281_s5, %s1003_s9  ;;  %p1007_p6 = scmp.lt.u32.totalorder %s1003_s9, %s1281_s5 }
 0x1fa   :  { %p1009_p7 = pnand %p1007_p6, %p1004_p5 }
 0x1fc   :  { %1012 = shalt.err (!%p1009_p7)
}
 0x1fd   :  { %717 = dma.vmem_to_hbm [thread:$0]  %s715_s30, 128, %s1281_s5, [#allocation3]  }
 0x1fe   :  { %1013 = dma.done.wait [#allocation3], 128  }
 0x1ff   :  { %1014 = vsyncadd [#allocation3], 4294967168 }
 0x200   :  { %721 = vsyncpa [#allocation3], 1 }

</bundles_post_ra>
